<compile_context>
chip_gen: v5e
topology: v5e:2x2
jax: 0.10.0
libtpu: 0.0.40
codegen_flags: <defaults>
</compile_context>

<pallas_src>
import functools

import jax
import jax.numpy as jnp
from jax import lax
from jax.experimental import pallas as pl
from jax.experimental.pallas import tpu as pltpu


def _round_up(x, m):
    return ((x + m - 1) // m) * m


def _choose_row_tiling(H, W, target_lanes):
    """Pick the row-tile height T (a divisor of H) for the spatial grid axis.

    Returns (T, halo_block_lanes, use_halo_spec).  Multi-tile mode requires
    T*W to be a multiple of 128 (lane-dense blocks) and of the halo block size
    (so the "peek at the next block" spec stays block-aligned).  Otherwise we
    fall back to one tile per image; the halo then lives inside the same block
    and the extra input spec is a tiny dummy that the kernel ignores.
    """
    halo = _round_up(2 * W, 128)
    cands = [t for t in range(1, H)
             if H % t == 0 and (t * W) % 128 == 0 and (t * W) % halo == 0]
    good = [t for t in cands if t * W <= target_lanes]
    if good:
        return max(good), halo, True
    if cands:
        return min(cands), halo, True
    return H, 128, False


def dsc_bn_kernel(xa_ref, xb_ref, ml_ref, mr_ref, dw_ref, w_ref, b_ref, o_ref,
                  *, W, T, use_halo_spec, compute_dtype):
    # One (image n, row-tile i) grid step.
    #   xa_ref : (1, C_in, T*W)  padded-input lanes [i*T*W, (i+1)*T*W)
    #   xb_ref : (1, C_in, HB)   next HB lanes (2 halo rows live in its head);
    #                            a dummy 128-lane block in single-tile mode.
    #   ml_ref : (1, L) f32      0/1 mask: extended position not in image col 0
    #   mr_ref : (1, L) f32      0/1 mask: extended position not in col W-1
    #   dw_ref : (C_in, 9)       depthwise 3x3 taps, row-major (kh, kw)
    #   w_ref  : (C_out, C_in)   BN-scaled pointwise weight
    #   b_ref  : (C_out, 1)      fully folded bias (dw bias + pw bias + BN)
    #   o_ref  : (1, C_out, T*W)
    TW = T * W
    xa = xa_ref[0]
    if use_halo_spec:
        xe = jnp.concatenate([xa, xb_ref[0]], axis=1)       # (C_in, L)
    else:
        xe = xa                                             # halo already inside
    L = xe.shape[1]

    # dj = -1 / +1 neighbours: built once (2 XLU rolls + 2 VPU mask-muls) and
    # reused by all three kernel rows.  Masks are host-precomputed 0/1 floats,
    # so there is no per-step iota / integer division / compare in the kernel.
    x_m1 = pltpu.roll(xe, shift=1, axis=1) * ml_ref[...]      # value at column c-1
    x_p1 = pltpu.roll(xe, shift=L - 1, axis=1) * mr_ref[...]  # value at column c+1
    neigh = (x_m1, xe, x_p1)

    # Depthwise 3x3: kh row offsets are lane-offset slices of the halo'd
    # buffers (vreg-aligned when W % 128 == 0); no roll-by-W, no row masks --
    # halo rows are real neighbours or the zero row padding.
    acc = None
    for kh in range(3):
        off = kh * W
        for kw in range(3):
            term = neigh[kw][:, off:off + TW] * dw_ref[:, 3 * kh + kw:3 * kh + kw + 1]
            acc = term if acc is None else acc + term

    # Pointwise 1x1 conv + fused eval-mode BN: one MXU matmul over channels
    # with f32 accumulation, lane-dense (C_out, T*W) output block.
    y = jnp.dot(w_ref[...].astype(compute_dtype), acc.astype(compute_dtype),
                preferred_element_type=jnp.float32)
    y = y + b_ref[...]
    o_ref[0] = y.astype(o_ref.dtype)


def dsc_with_bn_pallas(x_nchw, dw_w, dw_b, pw_w, pw_b, gamma, beta,
                       running_mean, running_var, *, eps=1e-5,
                       out_dtype=jnp.float32, compute_dtype=jnp.float32,
                       target_tile_lanes=16384):
    """Inference-mode dsc_with_bn (PyTorch-native parameter layouts).

    x_nchw: (N, C_in, H, W) f32
    dw_w:   (C_in, 1, 3, 3)     depthwise conv weight (torch layout)
    dw_b:   (C_in,)
    pw_w:   (C_out, C_in, 1, 1) pointwise conv weight (torch layout)
    pw_b:   (C_out,)
    Returns (N, C_out, H, W) in `out_dtype`.
    """
    N, C_in, H, W = x_nchw.shape
    KH, KW = int(dw_w.shape[2]), int(dw_w.shape[3])
    assert (KH, KW) == (3, 3), "specialized to the DFANet config: 3x3, s1, p1"
    C_out = pw_w.shape[0]
    HW = H * W

    # Fold eval-mode BN + both conv biases into one weight and one bias:
    #   out = scale*(Wpw @ (dconv(x) + dwb) + pwb) + shift
    #       = (scale*Wpw) @ dconv(x) + [(scale*Wpw) @ dwb + scale*pwb + shift]
    scale = gamma / jnp.sqrt(running_var + eps)
    shift = beta - running_mean * scale
    w_pw = pw_w.reshape(C_out, C_in)
    w_eff = scale[:, None] * w_pw                     # (C_out, C_in)
    b_eff = w_eff @ dw_b + scale * pw_b + shift       # (C_out,)
    dw_k = dw_w.reshape(C_in, KH * KW)                # one column per tap
    b2 = b_eff.reshape(C_out, 1)

    T, HB, use_halo_spec = _choose_row_tiling(H, W, target_tile_lanes)
    n_tiles = H // T
    TW = T * W

    # Zero-pad one row top & bottom (row halo == conv zero padding), flatten
    # the spatial dims, then pad the tail so every requested block is fully
    # in bounds (and lane lengths stay 128-aligned).
    xp = jnp.pad(x_nchw, ((0, 0), (0, 0), (1, 1), (0, 0)))
    base = (H + 2) * W
    if use_halo_spec:
        P = HW + HB               # multiple of 128 (TW and HB both are)
        L = TW + HB
    else:
        P = _round_up(max(base, 128), 128)
        L = P
    xpf = xp.reshape(N, C_in, base)
    if P > base:
        xpf = jnp.pad(xpf, ((0, 0), (0, 0), (0, P - base)))

    # Host-precomputed 0/1 column-boundary masks for the two lane-rolled
    # copies (valid for every tile because T*W is a multiple of W).
    col = jnp.arange(L, dtype=jnp.int32) % W
    mask_l = (col != 0).astype(jnp.float32).reshape(1, L)
    mask_r = (col != W - 1).astype(jnp.float32).reshape(1, L)

    hb_blk = TW // HB if use_halo_spec else 0
    if use_halo_spec:
        xa_spec = pl.BlockSpec((1, C_in, TW), lambda n, i: (n, 0, i))
        xb_spec = pl.BlockSpec((1, C_in, HB),
                               lambda n, i: (n, 0, (i + 1) * hb_blk))
    else:
        xa_spec = pl.BlockSpec((1, C_in, P), lambda n, i: (n, 0, i))
        xb_spec = pl.BlockSpec((1, C_in, 128), lambda n, i: (n, 0, 0))

    kernel = functools.partial(dsc_bn_kernel, W=W, T=T,
                               use_halo_spec=use_halo_spec,
                               compute_dtype=compute_dtype)

    out = pl.pallas_call(
        kernel,
        out_shape=jax.ShapeDtypeStruct((N, C_out, HW), out_dtype),
        grid_spec=pltpu.PrefetchScalarGridSpec(
            num_scalar_prefetch=0,
            grid=(N, n_tiles),
            in_specs=[
                xa_spec,
                xb_spec,
                pl.BlockSpec((1, L), lambda n, i: (0, 0)),
                pl.BlockSpec((1, L), lambda n, i: (0, 0)),
                pl.BlockSpec((C_in, KH * KW), lambda n, i: (0, 0)),
                pl.BlockSpec((C_out, C_in), lambda n, i: (0, 0)),
                pl.BlockSpec((C_out, 1), lambda n, i: (0, 0)),
            ],
            out_specs=pl.BlockSpec((1, C_out, TW), lambda n, i: (n, 0, i)),
        ),
        compiler_params=pltpu.CompilerParams(
            dimension_semantics=("parallel", "parallel"),
            vmem_limit_bytes=48 * 1024 * 1024),
    )(xpf, xpf, mask_l, mask_r, dw_k, w_eff, b2)
    return out.reshape(N, C_out, H, W)


def reference_jax(x, dw_w, dw_b, pw_w, pw_b, gamma, beta, running_mean,
                  running_var, *, padding=1, eps=1e-5):
    N, C_in, H, W = x.shape
    C_out = pw_w.shape[0]
    dn = lax.conv_dimension_numbers(x.shape, dw_w.shape, ("NCHW", "OIHW", "NCHW"))
    y = lax.conv_general_dilated(
        x, dw_w, window_strides=(1, 1),
        padding=[(padding, padding), (padding, padding)],
        dimension_numbers=dn, feature_group_count=C_in)
    y = y + dw_b[None, :, None, None]
    y = jnp.einsum("nchw,oc->nohw", y, pw_w.reshape(C_out, C_in))
    y = y + pw_b[None, :, None, None]
    scale = gamma / jnp.sqrt(running_var + eps)
    shift = beta - running_mean * scale
    return y * scale[None, :, None, None] + shift[None, :, None, None]


if __name__ == "__main__":
    def run_case(key, N, C_in, C_out, H, W, out_dtype, compute_dtype, atol, rtol):
        ks = jax.random.split(key, 9)
        x = jax.random.normal(ks[0], (N, C_in, H, W), jnp.float32)
        dw_w = 0.1 * jax.random.normal(ks[1], (C_in, 1, 3, 3), jnp.float32)
        dw_b = 0.05 * jax.random.normal(ks[2], (C_in,), jnp.float32)
        pw_w = 0.1 * jax.random.normal(ks[3], (C_out, C_in, 1, 1), jnp.float32)
        pw_b = 0.05 * jax.random.normal(ks[4], (C_out,), jnp.float32)
        gamma = 1.0 + 0.1 * jax.random.normal(ks[5], (C_out,), jnp.float32)
        beta = 0.1 * jax.random.normal(ks[6], (C_out,), jnp.float32)
        rm = 0.1 * jax.random.normal(ks[7], (C_out,), jnp.float32)
        rv = jnp.abs(1.0 + 0.1 * jax.random.normal(ks[8], (C_out,), jnp.float32))

        out = dsc_with_bn_pallas(x, dw_w, dw_b, pw_w, pw_b, gamma, beta, rm, rv,
                                 out_dtype=out_dtype, compute_dtype=compute_dtype)
        out = jax.block_until_ready(out)
        ref = reference_jax(x, dw_w, dw_b, pw_w, pw_b, gamma, beta, rm, rv)
        ref = jax.block_until_ready(ref)

        assert out.shape == (N, C_out, H, W), out.shape
        ok = jnp.allclose(out.astype(jnp.float32), ref, atol=atol, rtol=rtol)
        assert bool(ok), f"mismatch vs reference (shape {out.shape}, {out_dtype})"

    key = jax.random.PRNGKey(0)
    k1, k2 = jax.random.split(key)

    # 1) Multi-tile, lane-dense path (W multiple of 128), full f32.
    run_case(k1, 2, 8, 16, 16, 128, jnp.float32, jnp.float32, 1e-4, 1e-4)
    # 2) Same config through the bf16 output store + bf16 matmul-operand path
    #    (review items 7 & 9); accumulation stays f32.
    run_case(k1, 2, 8, 16, 16, 128, jnp.bfloat16, jnp.bfloat16, 3e-2, 3e-2)
    # 3) Single-tile fallback: small odd spatial size, W not a multiple of 128.
    run_case(k2, 1, 4, 8, 12, 20, jnp.float32, jnp.float32, 1e-4, 1e-4)

    print("KERNEL_OK")
</pallas_src>

<mosaic_0001>
module attributes {stable_mosaic.version = 11 : i64} {
  func.func @dsc_bn_kernel(%arg0: i32, %arg1: i32, %arg2: memref<1x8x1024xf32, #tpu.memory_space<vmem>>, %arg3: memref<1x8x256xf32, #tpu.memory_space<vmem>>, %arg4: memref<1x1280xf32, #tpu.memory_space<vmem>>, %arg5: memref<1x1280xf32, #tpu.memory_space<vmem>>, %arg6: memref<8x9xf32, #tpu.memory_space<vmem>>, %arg7: memref<16x8xf32, #tpu.memory_space<vmem>>, %arg8: memref<16x1xf32, #tpu.memory_space<vmem>>, %arg9: memref<1x16x1024xf32, #tpu.memory_space<vmem>>) attributes {dimension_semantics = [#tpu.dimension_semantics<parallel>, #tpu.dimension_semantics<parallel>], iteration_bounds = array<i64: 2, 2>, scalar_prefetch = 0 : i64, scratch_operands = 0 : i64, tpu.core_type = #tpu.core_type<tc>, window_params = [{transform_indices = @transform_0, window_bounds = array<i64: 1, 8, 1024>}, {transform_indices = @transform_1, window_bounds = array<i64: 1, 8, 256>}, {pipeline_mode = #tpu.pipeline_mode<synchronous>, transform_indices = @transform_2, window_bounds = array<i64: 1, 1280>}, {pipeline_mode = #tpu.pipeline_mode<synchronous>, transform_indices = @transform_3, window_bounds = array<i64: 1, 1280>}, {pipeline_mode = #tpu.pipeline_mode<synchronous>, transform_indices = @transform_4, window_bounds = array<i64: 8, 9>}, {pipeline_mode = #tpu.pipeline_mode<synchronous>, transform_indices = @transform_5, window_bounds = array<i64: 16, 8>}, {pipeline_mode = #tpu.pipeline_mode<synchronous>, transform_indices = @transform_6, window_bounds = array<i64: 16, 1>}, {transform_indices = @transform_7, window_bounds = array<i64: 1, 16, 1024>}]} {
    %c0 = arith.constant 0 : index
    %c0_0 = arith.constant 0 : index
    %c0_1 = arith.constant 0 : index
    %0 = vector.load %arg2[%c0, %c0_0, %c0_1] : memref<1x8x1024xf32, #tpu.memory_space<vmem>>, vector<1x8x1024xf32>
    %1 = vector.shape_cast %0 : vector<1x8x1024xf32> to vector<8x1024xf32>
    %c0_2 = arith.constant 0 : index
    %c0_3 = arith.constant 0 : index
    %c0_4 = arith.constant 0 : index
    %2 = vector.load %arg3[%c0_2, %c0_3, %c0_4] : memref<1x8x256xf32, #tpu.memory_space<vmem>>, vector<1x8x256xf32>
    %3 = vector.shape_cast %2 : vector<1x8x256xf32> to vector<8x256xf32>
    %4 = tpu.concatenate %1, %3 in 1 : vector<8x1024xf32>, vector<8x256xf32> -> vector<8x1280xf32>
    %c1_i32 = arith.constant 1 : i32
    %5 = tpu.dynamic_rotate %4 by %c1_i32 dim 1 : vector<8x1280xf32>, i32 -> vector<8x1280xf32>
    %c0_5 = arith.constant 0 : index
    %c0_6 = arith.constant 0 : index
    %6 = vector.load %arg4[%c0_5, %c0_6] : memref<1x1280xf32, #tpu.memory_space<vmem>>, vector<1x1280xf32>
    %7 = vector.broadcast %6 : vector<1x1280xf32> to vector<8x1280xf32>
    %8 = arith.mulf %5, %7 : vector<8x1280xf32>
    %c1279_i32 = arith.constant 1279 : i32
    %9 = tpu.dynamic_rotate %4 by %c1279_i32 dim 1 : vector<8x1280xf32>, i32 -> vector<8x1280xf32>
    %c0_7 = arith.constant 0 : index
    %c0_8 = arith.constant 0 : index
    %10 = vector.load %arg5[%c0_7, %c0_8] : memref<1x1280xf32, #tpu.memory_space<vmem>>, vector<1x1280xf32>
    %11 = vector.broadcast %10 : vector<1x1280xf32> to vector<8x1280xf32>
    %12 = arith.mulf %9, %11 : vector<8x1280xf32>
    %13 = vector.extract_strided_slice %8 {offsets = [0, 0], sizes = [8, 1024], strides = [1, 1]} : vector<8x1280xf32> to vector<8x1024xf32>
    %c0_9 = arith.constant 0 : index
    %c0_10 = arith.constant 0 : index
    %14 = vector.load %arg6[%c0_9, %c0_10] : memref<8x9xf32, #tpu.memory_space<vmem>>, vector<8x1xf32>
    %15 = vector.broadcast %14 : vector<8x1xf32> to vector<8x1024xf32>
    %16 = arith.mulf %13, %15 : vector<8x1024xf32>
    %17 = vector.extract_strided_slice %4 {offsets = [0, 0], sizes = [8, 1024], strides = [1, 1]} : vector<8x1280xf32> to vector<8x1024xf32>
    %c0_11 = arith.constant 0 : index
    %c1 = arith.constant 1 : index
    %18 = vector.load %arg6[%c0_11, %c1] : memref<8x9xf32, #tpu.memory_space<vmem>>, vector<8x1xf32>
    %19 = vector.broadcast %18 : vector<8x1xf32> to vector<8x1024xf32>
    %20 = arith.mulf %17, %19 : vector<8x1024xf32>
    %21 = arith.addf %16, %20 : vector<8x1024xf32>
    %22 = vector.extract_strided_slice %12 {offsets = [0, 0], sizes = [8, 1024], strides = [1, 1]} : vector<8x1280xf32> to vector<8x1024xf32>
    %c0_12 = arith.constant 0 : index
    %c2 = arith.constant 2 : index
    %23 = vector.load %arg6[%c0_12, %c2] : memref<8x9xf32, #tpu.memory_space<vmem>>, vector<8x1xf32>
    %24 = vector.broadcast %23 : vector<8x1xf32> to vector<8x1024xf32>
    %25 = arith.mulf %22, %24 : vector<8x1024xf32>
    %26 = arith.addf %21, %25 : vector<8x1024xf32>
    %27 = vector.extract_strided_slice %8 {offsets = [0, 128], sizes = [8, 1024], strides = [1, 1]} : vector<8x1280xf32> to vector<8x1024xf32>
    %c0_13 = arith.constant 0 : index
    %c3 = arith.constant 3 : index
    %28 = vector.load %arg6[%c0_13, %c3] : memref<8x9xf32, #tpu.memory_space<vmem>>, vector<8x1xf32>
    %29 = vector.broadcast %28 : vector<8x1xf32> to vector<8x1024xf32>
    %30 = arith.mulf %27, %29 : vector<8x1024xf32>
    %31 = arith.addf %26, %30 : vector<8x1024xf32>
    %32 = vector.extract_strided_slice %4 {offsets = [0, 128], sizes = [8, 1024], strides = [1, 1]} : vector<8x1280xf32> to vector<8x1024xf32>
    %c0_14 = arith.constant 0 : index
    %c4 = arith.constant 4 : index
    %33 = vector.load %arg6[%c0_14, %c4] : memref<8x9xf32, #tpu.memory_space<vmem>>, vector<8x1xf32>
    %34 = vector.broadcast %33 : vector<8x1xf32> to vector<8x1024xf32>
    %35 = arith.mulf %32, %34 : vector<8x1024xf32>
    %36 = arith.addf %31, %35 : vector<8x1024xf32>
    %37 = vector.extract_strided_slice %12 {offsets = [0, 128], sizes = [8, 1024], strides = [1, 1]} : vector<8x1280xf32> to vector<8x1024xf32>
    %c0_15 = arith.constant 0 : index
    %c5 = arith.constant 5 : index
    %38 = vector.load %arg6[%c0_15, %c5] : memref<8x9xf32, #tpu.memory_space<vmem>>, vector<8x1xf32>
    %39 = vector.broadcast %38 : vector<8x1xf32> to vector<8x1024xf32>
    %40 = arith.mulf %37, %39 : vector<8x1024xf32>
    %41 = arith.addf %36, %40 : vector<8x1024xf32>
    %42 = vector.extract_strided_slice %8 {offsets = [0, 256], sizes = [8, 1024], strides = [1, 1]} : vector<8x1280xf32> to vector<8x1024xf32>
    %c0_16 = arith.constant 0 : index
    %c6 = arith.constant 6 : index
    %43 = vector.load %arg6[%c0_16, %c6] : memref<8x9xf32, #tpu.memory_space<vmem>>, vector<8x1xf32>
    %44 = vector.broadcast %43 : vector<8x1xf32> to vector<8x1024xf32>
    %45 = arith.mulf %42, %44 : vector<8x1024xf32>
    %46 = arith.addf %41, %45 : vector<8x1024xf32>
    %47 = vector.extract_strided_slice %4 {offsets = [0, 256], sizes = [8, 1024], strides = [1, 1]} : vector<8x1280xf32> to vector<8x1024xf32>
    %c0_17 = arith.constant 0 : index
    %c7 = arith.constant 7 : index
    %48 = vector.load %arg6[%c0_17, %c7] : memref<8x9xf32, #tpu.memory_space<vmem>>, vector<8x1xf32>
    %49 = vector.broadcast %48 : vector<8x1xf32> to vector<8x1024xf32>
    %50 = arith.mulf %47, %49 : vector<8x1024xf32>
    %51 = arith.addf %46, %50 : vector<8x1024xf32>
    %52 = vector.extract_strided_slice %12 {offsets = [0, 256], sizes = [8, 1024], strides = [1, 1]} : vector<8x1280xf32> to vector<8x1024xf32>
    %c0_18 = arith.constant 0 : index
    %c8 = arith.constant 8 : index
    %53 = vector.load %arg6[%c0_18, %c8] : memref<8x9xf32, #tpu.memory_space<vmem>>, vector<8x1xf32>
    %54 = vector.broadcast %53 : vector<8x1xf32> to vector<8x1024xf32>
    %55 = arith.mulf %52, %54 : vector<8x1024xf32>
    %56 = arith.addf %51, %55 : vector<8x1024xf32>
    %c0_19 = arith.constant 0 : index
    %c0_20 = arith.constant 0 : index
    %57 = vector.load %arg7[%c0_19, %c0_20] : memref<16x8xf32, #tpu.memory_space<vmem>>, vector<16x8xf32>
    %cst = arith.constant dense<0.000000e+00> : vector<16x1024xf32>
    %58 = tpu.matmul %57, %56, %cst {dimension_numbers = #tpu.dot_dimension_numbers<[1], [0], [0], [1], [0, 0, 1, 1], [], []>} : vector<16x8xf32>, vector<8x1024xf32>, vector<16x1024xf32> -> vector<16x1024xf32>
    %c0_21 = arith.constant 0 : index
    %c0_22 = arith.constant 0 : index
    %59 = vector.load %arg8[%c0_21, %c0_22] : memref<16x1xf32, #tpu.memory_space<vmem>>, vector<16x1xf32>
    %60 = vector.broadcast %59 : vector<16x1xf32> to vector<16x1024xf32>
    %61 = arith.addf %58, %60 : vector<16x1024xf32>
    %c0_23 = arith.constant 0 : index
    %c0_24 = arith.constant 0 : index
    %c0_25 = arith.constant 0 : index
    %62 = vector.load %arg9[%c0_23, %c0_24, %c0_25] : memref<1x16x1024xf32, #tpu.memory_space<vmem>>, vector<1x16x1024xf32>
    %63 = vector.shape_cast %62 : vector<1x16x1024xf32> to vector<16x1024xf32>
    %64 = vector.shape_cast %61 : vector<16x1024xf32> to vector<1x16x1024xf32>
    tpu.vector_store %arg9[%c0_23, %c0_24, %c0_25], %64 {strides = array<i32>} : memref<1x16x1024xf32, #tpu.memory_space<vmem>>, vector<1x16x1024xf32>,
    return
  }
  func.func @transform_0(%arg0: i32, %arg1: i32) -> (i32, i32, i32) {
    %c0_i32 = arith.constant 0 : i32
    %c0_i32_0 = arith.constant 0 : i32
    return %arg0, %c0_i32, %arg1 : i32, i32, i32
  }
  func.func @transform_1(%arg0: i32, %arg1: i32) -> (i32, i32, i32) {
    %c1_i32 = arith.constant 1 : i32
    %0 = arith.addi %arg1, %c1_i32 : i32
    %c4_i32 = arith.constant 4 : i32
    %1 = arith.muli %0, %c4_i32 : i32
    %c0_i32 = arith.constant 0 : i32
    %c0_i32_0 = arith.constant 0 : i32
    return %arg0, %c0_i32, %1 : i32, i32, i32
  }
  func.func @transform_2(%arg0: i32, %arg1: i32) -> (i32, i32) {
    %c0_i32 = arith.constant 0 : i32
    %c0_i32_0 = arith.constant 0 : i32
    %c0_i32_1 = arith.constant 0 : i32
    return %c0_i32, %c0_i32_0 : i32, i32
  }
  func.func @transform_3(%arg0: i32, %arg1: i32) -> (i32, i32) {
    %c0_i32 = arith.constant 0 : i32
    %c0_i32_0 = arith.constant 0 : i32
    %c0_i32_1 = arith.constant 0 : i32
    return %c0_i32, %c0_i32_0 : i32, i32
  }
  func.func @transform_4(%arg0: i32, %arg1: i32) -> (i32, i32) {
    %c0_i32 = arith.constant 0 : i32
    %c0_i32_0 = arith.constant 0 : i32
    %c0_i32_1 = arith.constant 0 : i32
    return %c0_i32, %c0_i32_0 : i32, i32
  }
  func.func @transform_5(%arg0: i32, %arg1: i32) -> (i32, i32) {
    %c0_i32 = arith.constant 0 : i32
    %c0_i32_0 = arith.constant 0 : i32
    %c0_i32_1 = arith.constant 0 : i32
    return %c0_i32, %c0_i32_0 : i32, i32
  }
  func.func @transform_6(%arg0: i32, %arg1: i32) -> (i32, i32) {
    %c0_i32 = arith.constant 0 : i32
    %c0_i32_0 = arith.constant 0 : i32
    %c0_i32_1 = arith.constant 0 : i32
    return %c0_i32, %c0_i32_0 : i32, i32
  }
  func.func @transform_7(%arg0: i32, %arg1: i32) -> (i32, i32, i32) {
    %c0_i32 = arith.constant 0 : i32
    %c0_i32_0 = arith.constant 0 : i32
    return %arg0, %c0_i32, %arg1 : i32, i32, i32
  }
}

</mosaic_0001>

<bundles_post_ra>
// kernel: tpu_custom_call.1
= control target key start
LH: loop header
LB: loop body
LE: loop exit
PB: predicated region body
PF: predicated region fallthrough
CT: control target
= control target key end

     0   :  { %s2098_s0 = inlined_call_operand.hbm [shape: f32[2,8,2304], index: 0, kind: input, shape index: {}]   ;;  %s2099_s1 = inlined_call_operand.hbm [shape: f32[2,8,2304], index: 1, kind: input, shape index: {}]   ;;  %s2100_s2 = inlined_call_operand.vmem [shape: f32[1,1280], index: 2, kind: input, shape index: {}]   ;;  %s2101_s3 = inlined_call_operand.vmem [shape: f32[1,1280], index: 3, kind: input, shape index: {}]   ;;  %s2102_s4 = inlined_call_operand.vmem [shape: f32[8,9], index: 4, kind: input, shape index: {}]   ;;  %s2103_s5 = inlined_call_operand.vmem [shape: f32[16,8], index: 5, kind: input, shape index: {}]   ;;  %s2104_s6 = inlined_call_operand.vmem [shape: f32[16,1], index: 6, kind: input, shape index: {}]   ;;  %s2105_s7 = inlined_call_operand.hbm [shape: f32[2,16,2048], index: 7, kind: output, shape index: {}]  }
   0x1   :  { %2124 = sst [smem:[#allocation26_spill]] %s2100_s2 }
   0x2   :  { %2125 = sst [smem:[#allocation27_spill]] %s2103_s5 }
   0x3   :  { %2126 = sst [smem:[#allocation28_spill]] %s2105_s7 }
   0x4   :  { %12 = vsyncpa [#allocation3], 0 }
   0x5   :  { %14 = vsyncpa [#allocation3 + $0x1], 0 }
   0x6   :  { %15 = vsyncpa [#allocation6], 0 }
   0x7   :  { %17 = vsyncpa [#allocation6 + $0x1], 0 }
   0x8   :  { %18 = vsyncpa [#allocation4], 0 }
   0x9   :  { %20 = vsyncpa [#allocation4 + $0x1], 0  ;;  %s1474_s24 = smov 0   ;;  %s1476_s25 = smov 0  }
   0xa   :  { %s1478_s26 = smov 0   ;;  %s1480_s27 = smov 0  }
   0xb   :  { %s1482_s28 = smov 0   ;;  %s1484_s29 = smov 0  }
   0xc   :  { %s1486_s30 = smov 0   ;;  %s1488_s8 = smov 0  }
   0xd   :  { %s1490_s9 = smov 0   ;;  %s1492_s10 = smov 0  }
   0xe   :  { %s1494_s11 = smov 0  }
   0xf LB: > { %2127 = sst [smem:[#allocation11_spill]] %s1389_s27  ;;  %s2106_s12 = sadd.s32 4294967295, %s1417_s11   ;;  %s1417_s11 = sphi %s1494_s11, %s26_s11   ;;  %s1413_s10 = sphi %s1492_s10, %s2178_s10   ;;  %s1409_s9 = sphi %s1490_s9, %s2177_s9   ;;  %s1405_s8 = sphi %s1488_s8, %s2176_s8   ;;  %s1401_s30 = sphi %s1486_s30, %s2175_s30   ;;  %s1397_s29 = sphi %s1484_s29, %s2167_s29   ;;  %s1393_s28 = sphi %s1482_s28, %s2174_s28   ;;  %s1389_s27 = sphi %s1480_s27, %s2173_s27   ;;  %s1385_s26 = sphi %s1478_s26, %s2172_s26   ;;  %s1381_s25 = sphi %s1476_s25, %s2171_s25   ;;  %s1377_s24 = sphi %s1474_s24, %s2170_s24  }
  0x10   : > { %2128 = sst [smem:[#allocation12_spill]] %s1397_s29  ;;  %s35_s14 = sadd.s32 1, %s1409_s9 }
  0x11   : > { %2129 = sst [smem:[#allocation13_spill]] %s1401_s30  ;;  %s38_s15 = sadd.s32 1, %s1413_s10 }
  0x12   : > { %2130 = sst [smem:[#allocation14_spill]] %s1405_s8  ;;  %p36_p0 = scmp.ge.s32.totalorder %s35_s14, 2 }
  0x13   : > { %s47_s16 = sadd.s32 1, %s1397_s29  ;;  %p54_p1 = scmp.ne.s32.totalorder %s1397_s29, %s1393_s28 }
  0x14   : > { %p55_p2 = scmp.eq.s32.totalorder %s1417_s11, 0  ;;  %s2180_s14 = smov (%p36_p0, %s35_s14), 0 }
  0x15   : > { %2131 = sst [smem:[#allocation15_spill]] %s2180_s14  ;;  %s2182_s15 = smov (!%p36_p0, %s38_s15), %s1413_s10 }
  0x16   : > { %s43_s17 = ssub.s32 %s1409_s9, %s2180_s14  ;;  %p1547_p3 = por %p55_p2, %p54_p1 }
  0x17   : > { %p40_p4 = scmp.ge.s32.totalorder %s2182_s15, 2  ;;  %p60_p5 = scmp.ne.s32.totalorder %s1393_s28, %s1389_s27 }
  0x18   : > { %p1555_p6 = scmp.eq.s32.totalorder %s2106_s12, 0  ;;  %s1095_s20 = sshll.u32 %s1409_s9, 2 }
  0x19   : > { %s2184_s15 = smov (%p40_p4, %s2182_s15), 0  ;;  %s1096_s22 = sadd.s32 4, %s1095_s20 }
  0x1a   : > { %2134 = sst [smem:[#allocation16_spill]] %s2184_s15  ;;  %p1567_p7 = por %p1555_p6, %p60_p5 }
  0x1b   : > { %s42_s23 = ssub.s32 %s1413_s10, %s2184_s15  ;;  %s1097_s13 = sshll.u32 %s2180_s14, 2 }
  0x1c   : > { %s44_s12 = sor.u32 %s43_s17, %s42_s23  ;;  %s1098_s7 = sadd.s32 4, %s1097_s13 }
  0x1d   : > { %p45_p8 = scmp.eq.s32.totalorder %s44_s12, 0  ;;  %s75_s8 = ssub.s32 %s1096_s22, %s1098_s7 }
  0x1e   : > { %s76_s30 = sor.u32 %s75_s8, %s42_s23  ;;  %s79_s5 = sadd.s32 1, %s1385_s26 }
  0x1f   : > { %s1576_s2 = scalar_select %p45_p8, %s1397_s29, %s47_s16  }
  0x20   : > { %p77_p9 = scmp.eq.s32.totalorder %s76_s30, 0  ;;  %p86_p10 = scmp.ne.s32.totalorder %s1385_s26, %s1381_s25 }
  0x21   : > { %2136 = sst [smem:[#allocation17_spill]] %s1576_s2  ;;  %p92_p11 = scmp.ne.s32.totalorder %s1381_s25, %s1377_s24 }
  0x22   : > { %s2137_s20 = sadd.s32 4294967295, %s1417_s11   ;;  %p1589_p13 = por %p86_p10, %p55_p2 }
  0x23   : > { %p223_p12 = scmp.eq.s32.totalorder %s2137_s20, 3  ;;  %p1595_p0 = por %p92_p11, %p1555_p6 }
  0x24   : > { %s1585_s15 = scalar_select %p77_p9, %s1385_s26, %s79_s5  }
  0x25   : > { %p1602_p4 = por %p223_p12, %p54_p1  ;;  %s2143_s24 = sadd.s32 4294967294, %s1417_s11  }
  0x26   : > { %2138 = sst [smem:[#allocation18_spill]] %s1585_s15  ;;  %p229_p8 = scmp.eq.s32.totalorder %s2143_s24, 3 }
  0x27   : > { %s2141_s7 = scalar_select %p1602_p4, 1, 0 }
  0x28   : > { %p1611_p9 = por %p229_p8, %p60_p5  ;;  %p1058_p2 = scmp.ge.s32.totalorder %s1417_s11, 4 }
  0x29   : > { %2142 = sst [smem:[#allocation19_spill]] %s2141_s7 }
  0x2a   : > { %s2144_s5 = scalar_select %p1611_p9, 1, 0 }
  0x2b   : > { %260 = sbr.rel (%p1058_p2) target bundleno = 81 (0x51), region = 36 }
  0x2c   : > { %2145 = sst [smem:[#allocation20_spill]] %s2144_s5 }
  0x30   : > { %263 = sbr.rel (!%p1547_p3) target bundleno = 72 (0x48), region = 40  ;;  %s264_s30 = sand.u32 (%p1547_p3), 1, %s1397_s29  }
  0x31   : > { %s1060_s8 = sshll.u32 (%p1547_p3), %s1409_s9, 3  ;;  %s1059_s13 = sshll.u32 (%p1547_p3), %s264_s30, 6 }
  0x32   : > { %s265_s16 = scalar_lea.sflag (%p1547_p3), [#allocation3], %s264_s30  ;;  %s268_s17 = scalar_lea.vmem (%p1547_p3), [#allocation2], %s1059_s13 }
  0x33   : > { %s1099_s19 = smul.u32 (%p1547_p3), 18, %s1413_s10  ;;  %s286_s22 = sshll.u32 (%p1547_p3), %s268_s17, 4  ;;  %s287_s22 = int_to_ptr.vmem [resolvable:$true] %s286_s22 }
  0x34   : > { %s1233_s30 = scalar_lea.hbm (%p1547_p3), %s2098_s0, 288 }
  0x35   : > { %s279_s23 = sadd.s32 %s1099_s19, %s1060_s8 }
  0x36   : > { %s1063_s20 = sshll.u32 %s279_s23, 3 }
  0x37   : > { %s281_s15 = scalar_lea.hbm %s2098_s0, %s1063_s20 }
  0x38   : > { %s284_s5 = sshll.u32 %s281_s15, 4  ;;  %s285_s5 = int_to_ptr.hbm [resolvable:$true] %s284_s5 }
  0x39   : > { %s1222_s18 = sshra.s32 %s285_s5, 4  ;;  %s1223_s18 = int_to_ptr.hbm [resolvable:$true] %s1222_s18 }
  0x3a   : > { %s1229_s27 = scalar_lea.hbm %s1223_s18, 64 }
  0x3b   : > { %p1230_p1 = scmp.ne.s32.totalorder %s1223_s18, %s1229_s27  ;;  %p1235_p3 = scmp.lt.s32.totalorder %s1233_s30, %s1229_s27 }
  0x3d   : > { %p1237_p5 = pnand %p1235_p3, %p1230_p1 }
  0x3f   : > { %1240 = shalt.err (!%p1237_p5)
}
  0x40   : > { %s1241_s8 = sshra.s32 %s287_s22, 4  ;;  %s1419_s2 = smov [#allocation2]   ;;  %s1242_s8 = int_to_ptr.vmem [resolvable:$true] %s1241_s8 }
  0x41   : > { %s1248_s13 = scalar_lea.vmem %s1242_s8, 64  ;;  %s1252_s17 = scalar_lea.vmem %s1419_s2, 128 }
  0x42   : > { %p1249_p6 = scmp.ne.s32.totalorder %s1242_s8, %s1248_s13  ;;  %p1254_p10 = scmp.lt.s32.totalorder %s1252_s17, %s1248_s13 }
  0x44   : > { %p1256_p11 = pnand %p1254_p10, %p1249_p6 }
  0x46   : > { %1259 = shalt.err (!%p1256_p11)
}
  0x47   : > { %289 = dma.hbm_to_vmem [thread:$0]  %s285_s5, 1024, %s287_s22, %s265_s16  }
  0x48 PF: > { %s293_s29 = sand.u32 1, %s1385_s26   ;;  %s1067_s27 = sshll.u32 %s1409_s9, 3 }
  0x49   : > { %s1066_s15 = sshll.u32 %s293_s29, 4  ;;  %s978_s7 = smul.u32 18, %s1413_s10 }
  0x4a   : > { %s297_s23 = scalar_lea.vmem [#allocation5], %s1066_s15  ;;  %s294_s16 = scalar_lea.sflag [#allocation6], %s293_s29 }
  0x4b   : > { %s979_s19 = sadd.s32 %s1067_s27, %s978_s7  ;;  %s310_s20 = sshll.u32 %s297_s23, 4  ;;  %s311_s20 = int_to_ptr.vmem [resolvable:$true] %s310_s20 }
  0x4c   : > { %s1068_s24 = sshll.u32 %s979_s19, 3 }
  0x4d   : > { %s981_s8 = scalar_lea.hbm %s2099_s1, %s1068_s24 }
  0x4e   : > { %s982_s13 = scalar_lea.hbm %s981_s8, 64 }
  0x4f   : > { %s308_s5 = sshll.u32 %s982_s13, 4  ;;  %s309_s5 = int_to_ptr.hbm [resolvable:$true] %s308_s5 }
  0x50   : > { %1100 = dma.hbm_to_vmem [thread:$0]  (%p1589_p13), %s309_s5, 256, %s311_s20, %s294_s16  }
  0x51 PF: > { %p1069_p12 = scmp.ge.s32.totalorder %s1417_s11, 1  ;;  %p315_p8 = scmp.lt.s32.totalorder %s1417_s11, 5 }
  0x53   : > { %p316_p2 = pnand %p1069_p12, %p315_p8 }
  0x55   : > { %319 = sbr.rel (%p316_p2) target bundleno = 456 (0x1c8), region = 48 }
  0x5a   : > { %s1638_s22 = sand.u32 1, %s1393_s28  }
  0x5b   : > { %s1070_s2 = sshll.u32 %s1638_s22, 6  ;;  %s322_s17 = scalar_lea.sflag [#allocation3], %s1638_s22 }
  0x5c   : > { %s1642_s15 = scalar_lea.vmem [#allocation2], %s1070_s2 }
  0x5d   : > { %1362 = dma.done.wait (%p1567_p7), %s322_s17, 1024  }
  0x5e   : > { %1364 = vsyncadd (%p1567_p7), %s322_s17, 4294966272  ;;  %s331_s14 = sand.u32 1, %s1381_s25  }
  0x5f   : > { %s1649_s29 = sshll.u32 %s331_s14, 4  ;;  %s332_s27 = scalar_lea.sflag [#allocation6], %s331_s14 }
  0x60   : > { %s335_s7 = scalar_lea.vmem [#allocation5], %s1649_s29 }
  0x61   : > { %1366 = dma.done.wait (%p1595_p0), %s332_s27, 256  }
  0x62   : > { %1368 = vsyncadd (%p1595_p0), %s332_s27, 4294967040  ;;  %v1420_v0 = vmov 1   ;;  %v1421_v1 = vmov 0   ;;  %v1657_v2 = vld [vmem:[%s1642_s15 + $0x18] sm:$0xff]  ;;  %v1660_v3 = vld [vmem:[%s1642_s15 + $0x8] sm:$0xff]  ;;  %s1422_s21 = smov 127   ;;  %v411_v33 = vlaneseq }
  0x63   : > { %1213 = vset.pattern.permute.xlu1 %v1420_v0  ;;  %1212 = vset.pattern.permute.xlu0 %v1421_v1  ;;  %s1423_s12 = smov 1   ;;  %v1424_v4 = vmov 4   ;;  %v1669_v5 = vld [vmem:[%s1642_s15 + $0x20] sm:$0xff]  ;;  %v1672_v6 = vld [vmem:[%s1642_s15 + $0x10] sm:$0xff]  ;;  %v1690_v9 = vld [vmem:[%s335_s7 + $0x8] sm:$0xff]  ;;  %v1425_v10 = vmov 2  }
  0x64   : > { %464 = vrot.lane.b32.xlu2 %v1657_v2, %s1422_s21  ;;  %397 = vrot.lane.b32.xlu1 %v1657_v2, %s1423_s12  ;;  %v523_v7 = vld [vmem:[%s2102_s4] sm:$0xff]  ;;  %2146 = vst [vmem:[#allocation21_spill] sm:$0xff] %v1690_v9  ;;  %v1426_v11 = vmov 3   ;;  %v1701_v12 = vld [vmem:[%s1642_s15 + $0x28] sm:$0xff]  ;;  %v1427_v13 = vmov 5   ;;  %v1428_v15 = vmov 6  }
  0x65   : > { %393 = vrot.lane.b32.xlu0 %v1660_v3, %s1423_s12  ;;  %1216 = vset.pattern.permute.xlu2 %v1424_v4  ;;  %v1686_v8 = vld [vmem:[%s1642_s15] sm:$0xff]  ;;  %v1708_v14 = vld [vmem:[%s1642_s15 + $0x30] sm:$0xff]  ;;  %v1713_v16 = vld [vmem:[%s1642_s15 + $0x38] sm:$0xff]  ;;  %v1429_v17 = vmov 7   ;;  %v1430_v19 = vmov 8   ;;  %v1746_v36 = vand.u32 127, %v411_v33 }
  0x66   : > { %v1721_v18 = vld [vmem:[%s335_s7] sm:$0xff]  ;;  %s2151_s5 = sld [smem:[#allocation26_spill]]  ;;  %vm711_vm2 = vcmask 64512   ;;  %s1072_s20 = sshll.u32 %s1638_s22, 7 }
  0x67   : > { %2147 = vst [vmem:[#allocation22_spill] sm:$0xff] %v1721_v18  ;;  %v699_v20 = vld [vmem:[%s2104_s6] sm:$0xff]  ;;  %vm478_vm0 = vcmp.lt.s32.totalorder %v1746_v36, 127  ;;  %vm413_vm1 = vcmp.lt.s32.totalorder %v1746_v36, 1  ;;  %s2152_s27 = sld [smem:[#allocation27_spill]]  ;;  %s2026_s24 = scalar_lea.vmem [#allocation7], %s1072_s20 }
  0x68   : > { %v1751_v37 = vld [vmem:[%s2101_s3] sm:$0xff]  ;;  %s2159_s18 = sld [smem:[#allocation13_spill]]  ;;  %s919_s19 = scalar_lea.sflag [#allocation4], %s1638_s22 }
  0x69   : > { %v496_v39 = vperm.slane %v1751_v37, 3  ;;  %v495_v48 = vperm.slane %v1751_v37, 2  ;;  %v493_v55 = vperm.slane %v1751_v37, 0  ;;  %v494_v58 = vperm.slane %v1751_v37, 1  ;;  %s2160_s30 = sld [smem:[#allocation14_spill]] }
  0x6a   : > { %s2161_s14 = sld [smem:[#allocation28_spill]] }
  0x6c   : > { %466 = vrot.lane.b32.xlu2 %v1669_v5, %s1422_s21  ;;  %462 = vrot.lane.b32.xlu1 %v1672_v6, %s1422_s21  ;;  %v1757_v38 = vld [vmem:[%s2151_s5] sm:$0xff] }
  0x6d   : > { %395 = vrot.lane.b32.xlu0 %v1672_v6, %s1423_s12  ;;  %v432_v43 = vperm.slane %v1757_v38, 4  ;;  %v429_v44 = vperm.slane %v1757_v38, 1  ;;  %v430_v50 = vperm.slane %v1757_v38, 2  ;;  %v431_v51 = vperm.slane %v1757_v38, 3  ;;  %s2153_s7 = smov %s2152_s27 }
  0x6e   : > { %v428_v54 = vperm.slane %v1757_v38, 0  ;;  %v433_v59 = vperm.slane %v1757_v38, 5  ;;  %v434_v63 = vperm.slane %v1757_v38, 6  ;;  %s1090_s8 = sshll.u32 %s2159_s18, 3 }
  0x6f   : > { %s1091_s13 = sshll.u32 %s2160_s30, 5 }
  0x70   : > { %s930_s16 = sadd.s32 %s1091_s13, %s1090_s8  ;;  %s1309_s8 = scalar_lea.hbm %s2161_s14, 512 }
  0x71   : > { %s1092_s2 = sshll.u32 %s930_s16, 3 }
  0x72   : > { %s932_s29 = scalar_lea.hbm %s2161_s14, %s1092_s2 }
  0x74   : > { %399 = vrot.lane.b32.xlu2 %v1669_v5, %s1423_s12  ;;  %538 = vperm.xlu1 %1213, %v523_v7  }
  0x75   : > { %526 = vperm.xlu0 %1212, %v523_v7  }
  0x7c   : > { %1214 = vset.pattern.permute.xlu1 %v1425_v10  ;;  %391 = vrot.lane.b32.xlu2 %v1686_v8, %s1423_s12 }
  0x7d   : > { %409 = vrot.lane.b32.xlu0 %v1690_v9, %s1423_s12  ;;  %558 = vperm.xlu1 %1214, %v523_v7  }
  0x84   : > { %458 = vrot.lane.b32.xlu2 %v1686_v8, %s1422_s21 }
  0x85   : > { %460 = vrot.lane.b32.xlu0 %v1660_v3, %s1422_s21  ;;  %1215 = vset.pattern.permute.xlu1 %v1426_v11 }
  0x86   : > { %578 = vperm.xlu1 %1215, %v523_v7  }
  0x8c   : > { %598 = vperm.xlu2 %1216, %v523_v7  }
  0x8d   : > { %401 = vrot.lane.b32.xlu0 %v1701_v12, %s1423_s12 }
  0x8e   : > { %468 = vrot.lane.b32.xlu1 %v1701_v12, %s1422_s21 }
  0x8f   : > { %1217 = vset.pattern.permute.xlu1 %v1427_v13 }
  0x94   : > { %1218 = vset.pattern.permute.xlu2 %v1428_v15 }
  0x95   : > { %470 = vrot.lane.b32.xlu0 %v1708_v14, %s1422_s21  ;;  %638 = vperm.xlu2 %1218, %v523_v7  }
  0x96   : > { %618 = vperm.xlu1 %1217, %v523_v7  }
  0x9d   : > { %405 = vrot.lane.b32.xlu0 %v1713_v16, %s1423_s12  ;;  %403 = vrot.lane.b32.xlu2 %v1708_v14, %s1423_s12 }
  0x9e   : > { %1219 = vset.pattern.permute.xlu1 %v1429_v17 }
  0x9f   : > { %658 = vperm.xlu1 %1219, %v523_v7  }
  0xa5   : > { %474 = vrot.lane.b32.xlu0 %v1721_v18, %s1422_s21  ;;  %472 = vrot.lane.b32.xlu2 %v1713_v16, %s1422_s21 }
  0xa7   : > { %1220 = vset.pattern.permute.xlu1 %v1430_v19 }
  0xa8   : > { %678 = vperm.xlu1 %1220, %v523_v7   ;;  %v497_v7 = vperm.slane %v1751_v37, 4 }
  0xad   : > { %703 = vperm.xlu0 %1212, %v699_v20   ;;  %476 = vrot.lane.b32.xlu2 %v1690_v9, %s1422_s21  ;;  %s933_s21 = sshll.u32 %s2026_s24, 4  ;;  %s934_s21 = int_to_ptr.vmem [resolvable:$true] %s933_s21 }
  0xb0   : > { %407 = vrot.lane.b32.xlu1 %v1721_v18, %s1423_s12  ;;  %s935_s12 = sshll.u32 %s932_s29, 4  ;;  %s936_s12 = int_to_ptr.hbm [resolvable:$true] %s935_s12 }
  0xb1   : > { %1221 = vset.pattern.permute.xlu1 %v1421_v1  ;;  %s1303_s23 = sshra.s32 %s936_s12, 4  ;;  %s1304_s23 = int_to_ptr.hbm [resolvable:$true] %s1303_s23 }
  0xb2   : > { %s1305_s20 = scalar_lea.hbm %s1304_s23, 128  ;;  %p1310_p1 = scmp.lt.s32.totalorder %s1304_s23, %s2161_s14 }
  0xb3   : > { %p1306_p7 = scmp.ne.s32.totalorder %s1304_s23, %s1305_s20  ;;  %p1311_p3 = scmp.lt.s32.totalorder %s1309_s8, %s1305_s20 }
  0xb5   : > { %p1307_p13 = pnand %p1306_p7, %p1602_p4  ;;  %p1312_p5 = por %p1311_p3, %p1310_p1 }
  0xb7   : > { %p1308_p0 = pneg %p1307_p13 }
  0xb9   : > { %p1313_p6 = pnand %p1312_p5, %p1308_p0 }
  0xbe   : > { %v465_v21 = vpop.permute.xlu2 %464 }
  0xc6   : > { %v467_v22 = vpop.permute.xlu2 %466 }
  0xc7   : > { %v484_v42 = vsel %vm478_vm0, %v465_v21, %v467_v22 }
  0xc8   : > { %v1778_v52 = vmul.f32 %v496_v39, %v484_v42  ;;  %v498_v39 = vperm.slane %v1751_v37, 5 }
  0xce   : > { %v400_v23 = vpop.permute.xlu2 %399 }
  0xd6   : > { %v398_v24 = vpop.permute.xlu1 %397  ;;  %v392_v26 = vpop.permute.xlu2 %391 }
  0xd7   : > { %v394_v25 = vpop.permute.xlu0 %393  ;;  %v419_v46 = vsel %vm413_vm1, %v398_v24, %v400_v23 }
  0xd8   : > { %v422_v47 = vsel %vm413_vm1, %v392_v26, %v394_v25  ;;  %v1784_v56 = vmul.f32 %v432_v43, %v419_v46 }
  0xd9   : > { %v1786_v57 = vmul.f32 %v429_v44, %v422_v47 }
  0xde   : > { %v463_v27 = vpop.permute.xlu1 %462  ;;  %v1734_v29 = vpop.permute.xlu2 %458 }
  0xdf   : > { %v396_v28 = vpop.permute.xlu0 %395  ;;  %2148 = vst [vmem:[#allocation23_spill] sm:$0xff] %v1734_v29  ;;  %v485_v49 = vsel %vm478_vm0, %v463_v27, %v465_v21 }
  0xe0   : > { %v421_v53 = vsel %vm413_vm1, %v394_v25, %v396_v28  ;;  %v1790_v60 = vmul.f32 %v495_v48, %v485_v49  ;;  %v420_v61 = vsel %vm413_vm1, %v396_v28, %v398_v24 }
  0xe1   : > { %v1798_v0 = vmul.f32 %v430_v50, %v421_v53  ;;  %v1814_v19 = vmul.f32 %v431_v51, %v420_v61 }
  0xe6   : > { %v1736_v30 = vpop.permute.xlu1 %538  ;;  %v1740_v32 = vpop.permute.xlu2 %598 }
  0xe7   : > { %v1738_v31 = vpop.permute.xlu0 %526  ;;  %2149 = vst [vmem:[#allocation24_spill] sm:$0xff] %v1740_v32  ;;  %v542_v4 = vmul.f32 %v1736_v30, %v1660_v3  ;;  %v545_v15 = vmul.f32 %v1736_v30, %v1669_v5  ;;  %v541_v21 = vmul.f32 %v1736_v30, %v1686_v8  ;;  %v1826_v28 = vmul.f32 %v1736_v30, %v1708_v14 }
  0xe8   : > { %v530_v1 = vmul.f32 %v1738_v31, %v1786_v57  ;;  %v533_v17 = vmul.f32 %v1738_v31, %v1784_v56  ;;  %v1838_v47 = vmul.f32 %v1740_v32, %v1660_v3  ;;  %v531_v49 = vmul.f32 %v1738_v31, %v1798_v0 }
  0xe9   : > { %v543_v50 = vmul.f32 %v1736_v30, %v1672_v6  ;;  %v603_v53 = vmul.f32 %v1740_v32, %v1657_v2  ;;  %v532_v3 = vmul.f32 %v1738_v31, %v1814_v19 }
  0xea   : > { %v550_v43 = vadd.f32 %v542_v4, %v530_v1  ;;  %v553_v46 = vadd.f32 %v545_v15, %v533_v17  ;;  %v604_v4 = vmul.f32 %v1740_v32, %v1669_v5 }
  0xeb   : > { %v551_v17 = vadd.f32 %v543_v50, %v531_v49 }
  0xef   : > { %v1742_v34 = vpop.permute.xlu0 %409  ;;  %v1744_v35 = vpop.permute.xlu1 %558 }
  0xf0   : > { %2150 = vst [vmem:[#allocation25_spill] sm:$0xff] %v1742_v34  ;;  %v1761_v40 = vpop.permute.xlu2 %638  ;;  %v423_v62 = vsel %vm413_vm1, %v1742_v34, %v392_v26  ;;  %v563_v61 = vmul.f32 %v1744_v35, %v1790_v60 }
  0xf1   : > { %v448_v20 = vmul.f32 %v428_v54, %v423_v62  ;;  %v544_v54 = vmul.f32 %v1736_v30, %v1657_v2 }
  0xf2   : > { %v571_v34 = vadd.f32 %v563_v61, %v551_v17 }
  0xf3   : > { %v529_v48 = vmul.f32 %v1738_v31, %v448_v20  ;;  %v564_v20 = vmul.f32 %v1744_v35, %v1778_v52 }
  0xf7   : > { %v461_v41 = vpop.permute.xlu0 %460 }
  0xf8   : > { %v1767_v45 = vpop.permute.xlu1 %578  ;;  %v486_v10 = vsel %vm478_vm0, %v461_v41, %v463_v27  ;;  %v487_v11 = vsel %vm478_vm0, %v1734_v29, %v461_v41  ;;  %v1820_v26 = vpop.permute.xlu2 %403  ;;  %v546_v27 = vmul.f32 %v1736_v30, %v1701_v12 }
  0xf9   : > { %v513_v41 = vmul.f32 %v493_v55, %v487_v11  ;;  %v514_v8 = vmul.f32 %v494_v58, %v486_v10  ;;  %v606_v10 = vmul.f32 %v1740_v32, %v1708_v14  ;;  %v549_v11 = vadd.f32 %v541_v21, %v529_v48 }
  0xfa   : > { %v583_v9 = vmul.f32 %v1767_v45, %v1814_v19  ;;  %v552_v21 = vadd.f32 %v544_v54, %v532_v3 }
  0xfb   : > { %v561_v55 = vmul.f32 %v1744_v35, %v513_v41  ;;  %v562_v58 = vmul.f32 %v1744_v35, %v514_v8 }
  0xfc   : > { %v591_v54 = vadd.f32 %v583_v9, %v571_v34 }
  0xfd   : > { %v569_v29 = vadd.f32 %v561_v55, %v549_v11  ;;  %v570_v18 = vadd.f32 %v562_v58, %v550_v43  ;;  %v582_v43 = vmul.f32 %v1767_v45, %v1798_v0  ;;  %v435_v55 = vperm.slane %v1757_v38, 7 }
  0xff   : > { %v402_v13 = vpop.permute.xlu0 %401  ;;  %v590_v61 = vadd.f32 %v582_v43, %v570_v18 }
 0x100   : > { %v418_v24 = vsel %vm413_vm1, %v400_v23, %v402_v13  ;;  %v469_v25 = vpop.permute.xlu1 %468  ;;  %v499_v23 = vperm.slane %v1751_v37, 6 }
 0x101   : > { %v483_v33 = vsel %vm478_vm0, %v467_v22, %v469_v25  ;;  %v1834_v44 = vmul.f32 %v433_v59, %v418_v24  ;;  %v602_v22 = vmul.f32 %v1740_v32, %v1672_v6  ;;  %v417_v59 = vsel %vm413_vm1, %v402_v13, %v1820_v26 }
 0x102   : > { %v1831_v42 = vmul.f32 %v497_v7, %v483_v33  ;;  %v605_v7 = vmul.f32 %v1740_v32, %v1701_v12  ;;  %v454_v24 = vmul.f32 %v434_v63, %v417_v59  ;;  %v473_v32 = vpop.permute.xlu2 %472  ;;  %v584_v63 = vmul.f32 %v1767_v45, %v1784_v56 }
 0x103   : > { %v534_v62 = vmul.f32 %v1738_v31, %v1834_v44  ;;  %v641_v59 = vmul.f32 %v1761_v40, %v1798_v0  ;;  %v611_v0 = vadd.f32 %v603_v53, %v591_v54 }
 0x104   : > { %v565_v51 = vmul.f32 %v1744_v35, %v1831_v42  ;;  %v586_v50 = vmul.f32 %v1767_v45, %v454_v24 }
 0x105   : > { %v554_v48 = vadd.f32 %v546_v27, %v534_v62  ;;  %v572_v27 = vadd.f32 %v564_v20, %v552_v21  ;;  %v535_v21 = vmul.f32 %v1738_v31, %v454_v24 }
 0x106   : > { %v573_v33 = vadd.f32 %v565_v51, %v553_v46  ;;  %v581_v46 = vmul.f32 %v1767_v45, %v1786_v57  ;;  %v642_v57 = vmul.f32 %v1761_v40, %v1814_v19 }
 0x107   : > { %v471_v1 = vpop.permute.xlu0 %470 }
 0x108   : > { %v482_v13 = vsel %vm478_vm0, %v469_v25, %v471_v1  ;;  %v1872_v15 = vpop.permute.xlu1 %618  ;;  %v585_v25 = vmul.f32 %v1767_v45, %v1834_v44  ;;  %v589_v58 = vadd.f32 %v581_v46, %v569_v29  ;;  %v645_v46 = vmul.f32 %v1761_v40, %v454_v24 }
 0x109   : > { %v1876_v41 = vmul.f32 %v498_v39, %v482_v13  ;;  %v481_v39 = vsel %vm478_vm0, %v471_v1, %v473_v32  ;;  %v592_v13 = vadd.f32 %v584_v63, %v572_v27  ;;  %v621_v34 = vmul.f32 %v1872_v15, %v514_v8 }
 0x10a   : > { %v593_v51 = vadd.f32 %v585_v25, %v573_v33  ;;  %v519_v62 = vmul.f32 %v499_v23, %v481_v39  ;;  %v622_v29 = vmul.f32 %v1872_v15, %v1790_v60  ;;  %v623_v18 = vmul.f32 %v1872_v15, %v1778_v52 }
 0x10b   : > { %v566_v49 = vmul.f32 %v1744_v35, %v1876_v41  ;;  %v624_v19 = vmul.f32 %v1872_v15, %v1831_v42  ;;  %v625_v17 = vmul.f32 %v1872_v15, %v1876_v41  ;;  %v610_v8 = vadd.f32 %v602_v22, %v590_v61 }
 0x10c   : > { %v613_v23 = vadd.f32 %v605_v7, %v593_v51  ;;  %v643_v25 = vmul.f32 %v1761_v40, %v1784_v56  ;;  %v612_v53 = vadd.f32 %v604_v4, %v592_v13  ;;  %v631_v39 = vadd.f32 %v623_v18, %v611_v0 }
 0x10d   : > { %v574_v3 = vadd.f32 %v566_v49, %v554_v48  ;;  %v500_v48 = vperm.slane %v1751_v37, 7  ;;  %v630_v63 = vadd.f32 %v622_v29, %v610_v8  ;;  %v626_v7 = vmul.f32 %v1872_v15, %v519_v62 }
 0x10e   : > { %v632_v43 = vadd.f32 %v624_v19, %v612_v53  ;;  %v633_v22 = vadd.f32 %v625_v17, %v613_v23  ;;  %v555_v27 = vadd.f32 %v1826_v28, %v535_v21 }
 0x10f   : > { %v594_v1 = vadd.f32 %v586_v50, %v574_v3  ;;  %v1896_v11 = vpop.permute.xlu0 %405  ;;  %v567_v50 = vmul.f32 %v1744_v35, %v519_v62  ;;  %v650_v54 = vadd.f32 %v642_v57, %v630_v63 }
 0x110   : > { %v416_v9 = vsel %vm413_vm1, %v1820_v26, %v1896_v11  ;;  %v609_v26 = vadd.f32 %v1838_v47, %v589_v58  ;;  %v644_v47 = vmul.f32 %v1761_v40, %v1834_v44  ;;  %v653_v61 = vadd.f32 %v645_v46, %v633_v22 }
 0x111   : > { %v1909_v38 = vpop.permute.xlu1 %658  ;;  %v455_v20 = vmul.f32 %v435_v55, %v416_v9  ;;  %v614_v33 = vadd.f32 %v606_v10, %v594_v1  ;;  %v651_v55 = vadd.f32 %v643_v25, %v631_v39  ;;  %v575_v19 = vadd.f32 %v567_v50, %v555_v27  ;;  %v477_v39 = vpop.permute.xlu2 %476  ;;  %v2155_v27 = vld [vmem:[#allocation25_spill] sm:$0xff] }
 0x112   : > { %v629_v49 = vadd.f32 %v621_v34, %v609_v26  ;;  %v661_v37 = vmul.f32 %v1909_v38, %v1672_v6  ;;  %v662_v56 = vmul.f32 %v1909_v38, %v1657_v2  ;;  %v663_v51 = vmul.f32 %v1909_v38, %v1669_v5  ;;  %v425_v26 = vld [vmem:[%s2151_s5 + $0x8] sm:$0x3] }
 0x113   : > { %v646_v10 = vmul.f32 %v1761_v40, %v455_v20  ;;  %v634_v4 = vadd.f32 %v626_v7, %v614_v33  ;;  %v664_v44 = vmul.f32 %v1909_v38, %v1701_v12  ;;  %v652_v58 = vadd.f32 %v644_v47, %v632_v43  ;;  %v2154_v43 = vld [vmem:[#allocation24_spill] sm:$0xff] }
 0x114   : > { %v649_v6 = vadd.f32 %v641_v59, %v629_v49  ;;  %v665_v28 = vmul.f32 %v1909_v38, %v1708_v14  ;;  %v587_v1 = vmul.f32 %v1767_v45, %v455_v20  ;;  %v670_v9 = vadd.f32 %v662_v56, %v650_v54 }
 0x115   : > { %v654_v34 = vadd.f32 %v646_v10, %v634_v4  ;;  %v672_v59 = vadd.f32 %v664_v44, %v652_v58  ;;  %v666_v57 = vmul.f32 %v1909_v38, %v1713_v16  ;;  %v536_v25 = vmul.f32 %v1738_v31, %v455_v20 }
 0x116   : > { %v669_v5 = vadd.f32 %v661_v37, %v649_v6  ;;  %v673_v17 = vadd.f32 %v665_v28, %v653_v61  ;;  %v595_v53 = vadd.f32 %v587_v1, %v575_v19  ;;  %v436_v63 = vperm.slane %v425_v26, 0  ;;  %v2156_v6 = vld [vmem:[#allocation22_spill] sm:$0xff] }
 0x117   : > { %v475_v24 = vpop.permute.xlu0 %474  ;;  %v548_v7 = vmul.f32 %v1736_v30, %v1713_v16  ;;  %v607_v47 = vmul.f32 %v2154_v43, %v1713_v16  ;;  %v608_v54 = vmul.f32 %v2154_v43, %v2156_v6  ;;  %v667_v61 = vmul.f32 %v1909_v38, %v2156_v6 }
 0x118   : > { %v480_v3 = vsel %vm478_vm0, %v473_v32, %v475_v24  ;;  %v671_v32 = vadd.f32 %v663_v51, %v651_v55  ;;  %v479_v31 = vsel %vm478_vm0, %v475_v24, %v477_v39 }
 0x119   : > { %v520_v2 = vmul.f32 %v500_v48, %v480_v3  ;;  %v490_v48 = vld [vmem:[%s2101_s3 + $0x8] sm:$0x3]  ;;  %v556_v10 = vadd.f32 %v548_v7, %v536_v25  ;;  %v615_v56 = vadd.f32 %v607_v47, %v595_v53 }
 0x11a   : > { %v1940_v13 = vpop.permute.xlu1 %678  ;;  %v501_v46 = vperm.slane %v490_v48, 0  ;;  %v698_v3 = vld [vmem:[%s2153_s7 + $0x8] sm:$0xff] }
 0x11b   : > { %v681_v12 = vmul.f32 %v1940_v13, %v1790_v60  ;;  %v682_v29 = vmul.f32 %v1940_v13, %v1778_v52  ;;  %v683_v14 = vmul.f32 %v1940_v13, %v1831_v42  ;;  %v684_v18 = vmul.f32 %v1940_v13, %v1876_v41  ;;  %v700_v52 = vld [vmem:[%s2104_s6 + $0x8] sm:$0xff]  ;;  %v1963_v41 = vld [vmem:[%s2152_s27] sm:$0xff] }
 0x11c   : > { %v685_v0 = vmul.f32 %v1940_v13, %v519_v62  ;;  %v686_v60 = vmul.f32 %v1940_v13, %v520_v2  ;;  %v674_v62 = vadd.f32 %v666_v57, %v654_v34  ;;  %708 = vperm.xlu1 %1221, %v700_v52   ;;  %v568_v20 = vmul.f32 %v1744_v35, %v520_v2  ;;  %v2157_v34 = vld [vmem:[#allocation23_spill] sm:$0xff] }
 0x11d   : > { %v689_v23 = vadd.f32 %v681_v12, %v669_v5  ;;  %v690_v8 = vadd.f32 %v682_v29, %v670_v9  ;;  %v691_v42 = vadd.f32 %v683_v14, %v671_v32  ;;  %v692_v33 = vadd.f32 %v684_v18, %v672_v59  ;;  %v2158_v14 = vld [vmem:[#allocation21_spill] sm:$0xff] }
 0x11e   : > { %v693_v21 = vadd.f32 %v685_v0, %v673_v17  ;;  %v694_v49 = vadd.f32 %v686_v60, %v674_v62  ;;  %v627_v22 = vmul.f32 %v1872_v15, %v520_v2  ;;  %v437_v35 = vperm.slane %v425_v26, 1 }
 0x11f   : > { %733 = vmatpush.msra.mxu0 %v689_v23  ;;  %756 = vmatpush.msra.mxu1 %v690_v8  ;;  %v521_v4 = vmul.f32 %v501_v46, %v479_v31  ;;  %v576_v24 = vadd.f32 %v568_v20, %v556_v10  ;;  %v488_v12 = vsel %vm478_vm0, %v477_v39, %v2157_v34 }
 0x120   : > { %779 = vmatpush.msra.mxu2 %v691_v42  ;;  %802 = vmatpush.msra.mxu3 %v692_v33  ;;  %v668_v18 = vmul.f32 %v1909_v38, %v2158_v14 }
 0x121   : > { %1073 = vmatmul.msk.f32.vlgmr.msra.gmra.mxu0 %vm711_vm2, %v1963_v41  ;;  %1075 = vmatmul.msk.f32.vlgmr.msra.gmra.mxu1 %vm711_vm2, %v1963_v41  ;;  %v628_v28 = vmul.f32 %v1872_v15, %v521_v4  ;;  %v687_v9 = vmul.f32 %v1940_v13, %v521_v4 }
 0x122   : > { %1077 = vmatmul.msk.f32.vlgmr.msra.gmra.mxu2 %vm711_vm2, %v1963_v41  ;;  %v408_v30 = vpop.permute.xlu1 %407  ;;  %1079 = vmatmul.msk.f32.vlgmr.msra.gmra.mxu3 %vm711_vm2, %v1963_v41 }
 0x123   : > { %825 = vmatpush.msrb.mxu0 %v693_v21  ;;  %v415_v16 = vsel %vm413_vm1, %v1896_v11, %v408_v30  ;;  %848 = vmatpush.msrb.mxu1 %v694_v49  ;;  %v414_v50 = vsel %vm413_vm1, %v408_v30, %v2155_v27  ;;  %v635_v11 = vadd.f32 %v627_v22, %v615_v56 }
 0x124   : > { %v456_v37 = vmul.f32 %v436_v63, %v415_v16  ;;  %v457_v55 = vmul.f32 %v437_v35, %v414_v50 }
 0x126   : > { %v588_v51 = vmul.f32 %v1767_v45, %v456_v37  ;;  %v647_v44 = vmul.f32 %v1761_v40, %v456_v37  ;;  %v502_v45 = vperm.slane %v490_v48, 1  ;;  %v648_v32 = vmul.f32 %v1761_v40, %v457_v55  ;;  %v704_v40 = vpop.permute.xlu0 %703 }
 0x128   : > { %v596_v2 = vadd.f32 %v588_v51, %v576_v24  ;;  %v655_v58 = vadd.f32 %v647_v44, %v635_v11  ;;  %v522_v57 = vmul.f32 %v502_v45, %v488_v12 }
 0x129   : > { %1074 = vmatmul.msk.f32.gmra.mxu0 %vm711_vm2, %v698_v3  ;;  %1076 = vmatmul.msk.f32.gmra.mxu1 %vm711_vm2, %v698_v3 }
 0x12a   : > { %v616_v1 = vadd.f32 %v608_v54, %v596_v2  ;;  %1078 = vmatmul.msk.f32.gmra.mxu2 %vm711_vm2, %v698_v3  ;;  %v675_v5 = vadd.f32 %v667_v61, %v655_v58  ;;  %1080 = vmatmul.msk.f32.gmra.mxu3 %vm711_vm2, %v698_v3  ;;  %v688_v19 = vmul.f32 %v1940_v13, %v522_v57 }
 0x12c   : > { %v695_v15 = vadd.f32 %v687_v9, %v675_v5  ;;  %v636_v59 = vadd.f32 %v628_v28, %v616_v1 }
 0x12e   : > { %871 = vmatpush.msrb.mxu2 %v695_v15  ;;  %v656_v29 = vadd.f32 %v648_v32, %v636_v59 }
 0x130   : > { %v676_v0 = vadd.f32 %v668_v18, %v656_v29 }
 0x131   : > { %1081 = vmatmul.msk.f32.vlgmr.msrb.gmra.mxu0 %vm711_vm2, %v1963_v41  ;;  %1083 = vmatmul.msk.f32.vlgmr.msrb.gmra.mxu1 %vm711_vm2, %v1963_v41 }
 0x132   : > { %1085 = vmatmul.msk.f32.vlgmr.msrb.gmra.mxu2 %vm711_vm2, %v1963_v41  ;;  %v696_v36 = vadd.f32 %v688_v19, %v676_v0 }
 0x134   : > { %894 = vmatpush.msrb.mxu3 %v696_v36 }
 0x135   : > { %1087 = vmatmul.msk.f32.vlgmr.msrb.gmra.mxu3 %vm711_vm2, %v1963_v41 }
 0x139   : > { %1082 = vmatmul.msk.f32.gmra.mxu0 %vm711_vm2, %v698_v3  ;;  %1084 = vmatmul.msk.f32.gmra.mxu1 %vm711_vm2, %v698_v3 }
 0x13a   : > { %1086 = vmatmul.msk.f32.gmra.mxu2 %vm711_vm2, %v698_v3 }
 0x13d   : > { %1088 = vmatmul.msk.f32.gmra.mxu3 %vm711_vm2, %v698_v3 }
 0x18e   : > { %v709_v60 = vpop.permute.xlu1 %708 }
 0x19e   : > { %v735_v38 = vpop.f32.mrf.mxu0  ;;  %v758_v23 = vpop.f32.mrf.mxu1 }
 0x19f   : > { %v736_v13 = vadd.f32 %v735_v38, %v704_v40  ;;  %v759_v17 = vadd.f32 %v758_v23, %v704_v40 }
 0x1a1   : > { %902 = vst [vmem:[%s2026_s24] sm:$0xff] %v736_v13 }
 0x1a2   : > { %903 = vst [vmem:[%s2026_s24 + $0x8] sm:$0xff] %v759_v17 }
 0x1a5   : > { %v781_v26 = vpop.f32.mrf.mxu2  ;;  %v804_v8 = vpop.f32.mrf.mxu3 }
 0x1a6   : > { %v782_v52 = vadd.f32 %v781_v26, %v704_v40  ;;  %v738_v42 = vpop.f32.mrf.mxu0  ;;  %v805_v33 = vadd.f32 %v804_v8, %v704_v40  ;;  %v761_v41 = vpop.f32.mrf.mxu1 }
 0x1a7   : > { %v739_v62 = vadd.f32 %v738_v42, %v709_v60  ;;  %v762_v21 = vadd.f32 %v761_v41, %v709_v60 }
 0x1a8   : > { %904 = vst [vmem:[%s2026_s24 + $0x10] sm:$0xff] %v782_v52 }
 0x1a9   : > { %905 = vst [vmem:[%s2026_s24 + $0x18] sm:$0xff] %v805_v33 }
 0x1aa   : > { %910 = vst [vmem:[%s2026_s24 + $0x40] sm:$0xff] %v739_v62 }
 0x1ab   : > { %911 = vst [vmem:[%s2026_s24 + $0x48] sm:$0xff] %v762_v21 }
 0x1ad   : > { %v784_v48 = vpop.f32.mrf.mxu2  ;;  %v807_v53 = vpop.f32.mrf.mxu3 }
 0x1ae   : > { %v827_v25 = vpop.f32.mrf.mxu0  ;;  %v785_v49 = vadd.f32 %v784_v48, %v709_v60  ;;  %v850_v39 = vpop.f32.mrf.mxu1  ;;  %v808_v7 = vadd.f32 %v807_v53, %v709_v60 }
 0x1af   : > { %v828_v63 = vadd.f32 %v827_v25, %v704_v40  ;;  %v851_v46 = vadd.f32 %v850_v39, %v704_v40 }
 0x1b0   : > { %912 = vst [vmem:[%s2026_s24 + $0x50] sm:$0xff] %v785_v49 }
 0x1b1   : > { %906 = vst [vmem:[%s2026_s24 + $0x20] sm:$0xff] %v828_v63 }
 0x1b2   : > { %907 = vst [vmem:[%s2026_s24 + $0x28] sm:$0xff] %v851_v46 }
 0x1b3   : > { %913 = vst [vmem:[%s2026_s24 + $0x58] sm:$0xff] %v808_v7 }
 0x1b5   : > { %v873_v43 = vpop.f32.mrf.mxu2 }
 0x1b6   : > { %v874_v47 = vadd.f32 %v873_v43, %v704_v40  ;;  %v830_v31 = vpop.f32.mrf.mxu0  ;;  %v853_v22 = vpop.f32.mrf.mxu1 }
 0x1b7   : > { %v831_v20 = vadd.f32 %v830_v31, %v709_v60  ;;  %v854_v16 = vadd.f32 %v853_v22, %v709_v60 }
 0x1b8   : > { %908 = vst [vmem:[%s2026_s24 + $0x30] sm:$0xff] %v874_v47  ;;  %v896_v30 = vpop.f32.mrf.mxu3 }
 0x1b9   : > { %v897_v10 = vadd.f32 %v896_v30, %v704_v40  ;;  %914 = vst [vmem:[%s2026_s24 + $0x60] sm:$0xff] %v831_v20 }
 0x1ba   : > { %915 = vst [vmem:[%s2026_s24 + $0x68] sm:$0xff] %v854_v16 }
 0x1bb   : > { %909 = vst [vmem:[%s2026_s24 + $0x38] sm:$0xff] %v897_v10 }
 0x1bd   : > { %v876_v35 = vpop.f32.mrf.mxu2 }
 0x1be   : > { %v877_v37 = vadd.f32 %v876_v35, %v709_v60 }
 0x1c0   : > { %916 = vst [vmem:[%s2026_s24 + $0x70] sm:$0xff] %v877_v37  ;;  %v899_v56 = vpop.f32.mrf.mxu3 }
 0x1c1   : > { %v900_v4 = vadd.f32 %v899_v56, %v709_v60 }
 0x1c3   : > { %917 = vst [vmem:[%s2026_s24 + $0x78] sm:$0xff] %v900_v4 }
 0x1c4   : > { %1316 = shalt.err (!%p1313_p6)
}
 0x1c5   : > { %s1431_s22 = smov 1024   ;;  %s1432_s24 = smov 2048  }
 0x1c6   : > { %s1433_s2 = smov 64  }
 0x1c7   : > { %1103 = dma.vmem_to_hbm [thread:$0]  (%p1602_p4), %s934_s21, 2048, %s936_s12, %s919_s19, %s1431_s22, %s1432_s24, %s1433_s2  }
 0x1c8 PF: > { %s2163_s17 = sld [smem:[#allocation11_spill]]  ;;  %p1109_p10 = scmp.ge.s32.totalorder %s1417_s11, 2 }
 0x1ca   : > { %p1106_p11 = pnand %p1109_p10, %p1611_p9 }
 0x1cc   : > { %p1107_p12 = pneg %p1106_p11 }
 0x1ce   : > { %s950_s29 = sand.u32 1, %s2163_s17  }
 0x1cf   : > { %s951_s23 = scalar_lea.sflag [#allocation4], %s950_s29 }
 0x1d0   : > { %1370 = dma.done.wait (%p1107_p12), %s951_s23, 2048  }
 0x1d1   : > { %1372 = vsyncadd (%p1107_p12), %s951_s23, 4294965248  ;;  %s26_s11 = sadd.s32 1, %s1417_s11   ;;  %s2165_s20 = sld [smem:[#allocation18_spill]] }
 0x1d2   : > { %p23_p8 = scmp.ge.s32.totalorder %s26_s11, 6   ;;  %s2166_s21 = sld [smem:[#allocation12_spill]] }
 0x1d3   : > { %s2167_s29 = sld [smem:[#allocation17_spill]]  ;;  %s2170_s24 = smov %s1381_s25 }
 0x1d4   : > { %s2168_s12 = sld [smem:[#allocation15_spill]]  ;;  %s2171_s25 = smov %s1385_s26 }
 0x1d5   : > { %s2169_s19 = sld [smem:[#allocation16_spill]]  ;;  %s2173_s27 = smov %s1393_s28 }
 0x1d6   : > { %s2175_s30 = smov %s1409_s9  ;;  %s2176_s8 = smov %s1413_s10 }
 0x1d7   : > { %s2172_s26 = smov %s2165_s20  ;;  %25 = sbr.rel (!%p23_p8) target bundleno = 15 (0xf), region = 106 }
 0x1d8   : > { %s2174_s28 = smov %s2166_s21 }
 0x1da   : > { %s2177_s9 = smov %s2168_s12 }
 0x1db   : > { %s2178_s10 = smov %s2169_s19 }
 0x1dc   :  { %957 = vsyncpa [#allocation3], 1 }
 0x1dd   :  { %959 = vsyncpa [#allocation3 + $0x1], 1 }
 0x1de   :  { %960 = vsyncpa [#allocation6], 1 }
 0x1df   :  { %962 = vsyncpa [#allocation6 + $0x1], 1 }
 0x1e0   :  { %963 = vsyncpa [#allocation4], 1 }
 0x1e1   :  { %965 = vsyncpa [#allocation4 + $0x1], 1 }

</bundles_post_ra>
